<compile_context>
chip_gen: v7x
topology: tpu7x:2x2x1
jax: 0.10.0
libtpu: 0.0.40
codegen_flags: <defaults>
</compile_context>

<pallas_src>
import functools

import jax
import jax.numpy as jnp
from jax.experimental import pallas as pl
from jax.experimental.pallas import tpu as pltpu


# --------------------------------------------------------------------------- #
# Hardware queries (safe fallbacks — never fail off-TPU or on unknown chips). #
# --------------------------------------------------------------------------- #
def _tpu_info():
    try:
        return pltpu.get_tpu_info()
    except Exception:
        return None


def _num_tensorcores():
    """TensorCores per chip (1 on v5e/v6e, 2 on v7x).  Defaults to 1."""
    info = _tpu_info()
    if info is not None:
        for attr in ("tensor_cores_per_chip", "num_tensor_cores",
                     "tensorcores_per_chip", "num_cores"):
            v = getattr(info, attr, None)
            if isinstance(v, int) and v > 0:
                return int(v)
    return 1


def _vmem_limit_bytes():
    """Scoped VMEM limit: fraction of physical capacity, capped at 48 MiB."""
    cap = None
    info = _tpu_info()
    if info is not None:
        cap = getattr(info, "vmem_capacity_bytes", None)
    if not cap:
        cap = 64 * 1024 * 1024  # conservative: v7x per-TensorCore VMEM
    return int(min(48 * 1024 * 1024, (cap * 3) // 4))


def _choose_block_shape(n, c, itemsize, budget_bytes):
    """Pick (block_rows, block_cols).

    Budget counts 2 inputs x 2 pipeline buffers (native dtype) plus ~6
    full-tile f32 temporaries per element, so the working set stays inside the
    VMEM limit even for bf16 inputs / large C.
    """
    row_align = 16 if itemsize < 4 else 8
    per_elem = 4 * itemsize + 6 * 4
    max_elems = max(budget_bytes // per_elem, row_align * 128)

    if c <= 128 or row_align * c <= max_elems:
        # Full-C row blocks fit: no class-axis split needed.
        tc = c
        tm = (max_elems // c) // row_align * row_align
        tm = max(row_align, min(tm, 1024))
        if tm >= n:
            tm = n
        return int(tm), int(tc)

    # Vocab-scale C: split the class axis (online logsumexp inside the kernel).
    tc = (max_elems // row_align) // 128 * 128
    tc = max(128, min(tc, (c // 128) * 128))
    tm = (max_elems // tc) // row_align * row_align
    tm = max(row_align, min(tm, 1024))
    if tm >= n:
        tm = n
    return int(tm), int(tc)


# --------------------------------------------------------------------------- #
# Kernel.                                                                     #
# --------------------------------------------------------------------------- #
def _kl_kernel(x_ref, t_ref, part_ref,
               m_x_ref, m_t_ref, z_x_ref, z_t_ref, s_ref, acc_ref,
               *, inv_t, n_rows, n_cols, tm, tc, bpp,
               mask_cols, exp_in_bf16, approx_recip):
    p = pl.program_id(0)          # partition ("parallel" across TensorCores)
    i = pl.program_id(1)          # row-block index within partition
    j = pl.program_id(2)          # class-block index (online logsumexp axis)
    n_col_blocks = pl.num_programs(2)

    @pl.when(jnp.logical_and(i == 0, j == 0))
    def _init_acc():
        acc_ref[...] = jnp.zeros_like(acc_ref)

    @pl.when(j == 0)
    def _init_row_state():
        m_x_ref[...] = jnp.full(m_x_ref.shape, -jnp.inf, jnp.float32)
        m_t_ref[...] = jnp.full(m_t_ref.shape, -jnp.inf, jnp.float32)
        z_x_ref[...] = jnp.zeros_like(z_x_ref)
        z_t_ref[...] = jnp.zeros_like(z_t_ref)
        s_ref[...] = jnp.zeros_like(s_ref)

    # Temperature-scaled logits (multiply by precomputed 1/T, no divides).
    x = x_ref[...].astype(jnp.float32) * inv_t      # student
    t = t_ref[...].astype(jnp.float32) * inv_t      # teacher

    if mask_cols:
        # Partial trailing C block: invalid columns -> -inf (exp -> 0) and the
        # (t - x) factor -> 0 so garbage in the padded region never leaks
        # (avoids 0 * NaN) and is excluded from every reduction.
        col_ids = j * tc + jax.lax.broadcasted_iota(jnp.int32, (1, tc), 1)
        valid_c = col_ids < n_cols
        xm = jnp.where(valid_c, x, -jnp.inf)
        tv = jnp.where(valid_c, t, -jnp.inf)
        diff = jnp.where(valid_c, t - x, 0.0)
    else:
        xm, tv, diff = x, t, t - x

    bx = jnp.max(xm, axis=-1, keepdims=True)
    bt = jnp.max(tv, axis=-1, keepdims=True)
    m_x_new = jnp.maximum(m_x_ref[...], bx)
    m_t_new = jnp.maximum(m_t_ref[...], bt)

    def _exp(v):
        # Optional bf16 EUP path (v6e/v7x run bf16 transcendentals ~2x faster);
        # accumulation stays in f32.
        if exp_in_bf16:
            return jnp.exp(v.astype(jnp.bfloat16)).astype(jnp.float32)
        return jnp.exp(v)

    e_x = _exp(xm - m_x_new)                        # invalid cols -> exp(-inf) = 0
    e_t = _exp(tv - m_t_new)

    # Per-row rescale factors (exp(-inf) = 0 on the first class block).
    a_x = jnp.exp(m_x_ref[...] - m_x_new)
    a_t = jnp.exp(m_t_ref[...] - m_t_new)

    z_x_ref[...] = a_x * z_x_ref[...] + jnp.sum(e_x, axis=-1, keepdims=True)
    z_t_ref[...] = a_t * z_t_ref[...] + jnp.sum(e_t, axis=-1, keepdims=True)
    s_ref[...] = a_t * s_ref[...] + jnp.sum(e_t * diff, axis=-1, keepdims=True)
    m_x_ref[...] = m_x_new
    m_t_ref[...] = m_t_new

    @pl.when(j == n_col_blocks - 1)
    def _row_block_done():
        z_t = z_t_ref[...]
        inv_z_t = pl.reciprocal(z_t, approx=True) if approx_recip else 1.0 / z_t
        # sum_c p*(log p - log q) = S/z_t + (m_x - m_t) + (log z_x - log z_t)
        kl_row = (s_ref[...] * inv_z_t
                  + (m_x_ref[...] - m_t_ref[...])
                  + (jnp.log(z_x_ref[...]) - jnp.log(z_t)))
        # Mask rows beyond the logical batch (partial / duplicated tail blocks).
        block_idx = p * bpp + i          # deliberately unclamped: dup blocks -> 0
        row_ids = block_idx * tm + jax.lax.broadcasted_iota(jnp.int32, (tm, 1), 0)
        kl_row = jnp.where(row_ids < n_rows, kl_row, 0.0)
        acc_ref[...] = acc_ref[...] + kl_row        # VALU add; no cross-sublane work

    @pl.when(jnp.logical_and(i == pl.num_programs(1) - 1, j == n_col_blocks - 1))
    def _finish():
        # Single deferred cross-sublane reduction, lane-dense output block.
        total = jnp.sum(acc_ref[...], keepdims=True)
        part_ref[...] = jnp.broadcast_to(total, part_ref.shape)


# --------------------------------------------------------------------------- #
# Wrapper.                                                                    #
# --------------------------------------------------------------------------- #
def loss_kl(outputs, teacher_outputs, T=1.0, *,
            block_rows=None, block_cols=None,
            exp_in_bf16=False, stream_in_bf16=False,
            approx_reciprocal=True, num_partitions=None):
    """Pallas TPU implementation of the PyTorch `loss_kl.forward`.

    `T` must be a static Python number (it is folded into the kernel).
    `approx_reciprocal=True` uses the EUP approximate 1/x (~1e-3 rel error per
    row); set False for a bit-closer match to the framework reference.
    `stream_in_bf16=True` halves HBM traffic for f32 callers (lossy cast) —
    useful on HBM-bound v5e/v6e; off by default to preserve exact semantics.
    """
    assert outputs.shape == teacher_outputs.shape
    assert outputs.ndim == 2, "expected (batch, num_classes) logits"
    n, c = outputs.shape
    inv_t = 1.0 / float(T)

    if stream_in_bf16 and outputs.dtype == jnp.float32:
        outputs = outputs.astype(jnp.bfloat16)
        teacher_outputs = teacher_outputs.astype(jnp.bfloat16)

    itemsize = jnp.dtype(outputs.dtype).itemsize
    vmem_limit = _vmem_limit_bytes()
    tm_auto, tc_auto = _choose_block_shape(n, c, itemsize, (vmem_limit * 3) // 4)
    tm = int(min(block_rows, n)) if block_rows is not None else tm_auto
    tc = int(min(block_cols, c)) if block_cols is not None else tc_auto

    n_row_blocks = pl.cdiv(n, tm)
    n_col_blocks = pl.cdiv(c, tc)
    mask_cols = (n_col_blocks * tc) != c     # partial trailing C block present

    # Only split the reduction into partitions when there is real hardware
    # parallelism (>1 TensorCore, i.e. v7x); on v5e/v6e this is pure overhead.
    cores = _num_tensorcores() if num_partitions is None else int(num_partitions)
    n_parts = max(1, min(int(cores), int(n_row_blocks)))
    bpp = pl.cdiv(n_row_blocks, n_parts)

    def in_map(p, i, j):
        # Clamp so duplicated tail row-blocks stay in range; the kernel masks by
        # logical row index, so duplicated rows contribute exactly zero.
        return (jnp.minimum(p * bpp + i, n_row_blocks - 1), j)

    kernel = functools.partial(
        _kl_kernel, inv_t=inv_t, n_rows=n, n_cols=c, tm=tm, tc=tc, bpp=bpp,
        mask_cols=mask_cols, exp_in_bf16=bool(exp_in_bf16),
        approx_recip=bool(approx_reciprocal))

    if n_parts > 1:
        # "parallel" is the documented megacore sharding mechanism; on v7x
        # verify against pltpu.CORE_PARALLEL if the split is not observed.
        dims = ("parallel", "arbitrary", "arbitrary")
    else:
        dims = ("arbitrary", "arbitrary", "arbitrary")

    # Note: for very small C-split tiles, pipeline_mode=pl.Buffered(3) on the
    # input BlockSpecs can hide per-step DMA overhead (left at default 2 here).
    partials = pl.pallas_call(
        kernel,
        out_shape=jax.ShapeDtypeStruct((n_parts * 8, 128), jnp.float32),
        grid_spec=pltpu.PrefetchScalarGridSpec(
            num_scalar_prefetch=0,
            grid=(n_parts, bpp, n_col_blocks),
            in_specs=[
                pl.BlockSpec((tm, tc), in_map),
                pl.BlockSpec((tm, tc), in_map),
            ],
            out_specs=pl.BlockSpec((8, 128), lambda p, i, j: (p, 0)),
            scratch_shapes=[pltpu.VMEM((tm, 1), jnp.float32)  # m_x, m_t, z_x,
                            for _ in range(6)],               # z_t, s, acc
        ),
        compiler_params=pltpu.CompilerParams(
            dimension_semantics=dims,
            vmem_limit_bytes=vmem_limit,
        ),
    )(outputs, teacher_outputs)

    scale = float(T) * float(T) / float(n)
    return scale * jnp.sum(partials[0::8, 0])


def _loss_kl_ref(outputs, teacher_outputs, T=1.0):
    """Pure-JAX reference for correctness checking."""
    x = outputs.astype(jnp.float32) / T
    t = teacher_outputs.astype(jnp.float32) / T
    log_q = jax.nn.log_softmax(x, axis=-1)
    p = jax.nn.softmax(t, axis=-1)
    log_p = jax.nn.log_softmax(t, axis=-1)
    return T * T * jnp.sum(p * (log_p - log_q)) / outputs.shape[0]


if __name__ == "__main__":
    key = jax.random.PRNGKey(0)
    k1, k2, k3, k4, k5, k6 = jax.random.split(key, 6)

    # 1) Small (batch, num_classes) logits consistent with the module.
    batch, num_classes, T = 8, 32, 1.0
    x = jax.random.normal(k1, (batch, num_classes), dtype=jnp.float32)
    t = jax.random.normal(k2, (batch, num_classes), dtype=jnp.float32)
    out = loss_kl(x, t, T)
    jax.block_until_ready(out)
    ref = _loss_kl_ref(x, t, T)
    assert jnp.allclose(out, ref, rtol=2e-3, atol=1e-5), (out, ref)

    # 2) Uneven batch, native bf16 inputs, multiple row blocks, T != 1.
    b2, c2, T2 = 300, 160, 2.0
    x2 = jax.random.normal(k3, (b2, c2), dtype=jnp.bfloat16)
    t2 = jax.random.normal(k4, (b2, c2), dtype=jnp.bfloat16)
    out2 = loss_kl(x2, t2, T2, block_rows=128)
    jax.block_until_ready(out2)
    ref2 = _loss_kl_ref(x2, t2, T2)
    assert jnp.allclose(out2, ref2, rtol=2e-3, atol=1e-4), (out2, ref2)

    # 3) Forced class-axis split (online-logsumexp / vocab-scale path) with
    #    uneven C and uneven rows — exercises both column and row masking.
    b3, c3, T3 = 70, 333, 1.5
    x3 = jax.random.normal(k5, (b3, c3), dtype=jnp.float32)
    t3 = jax.random.normal(k6, (b3, c3), dtype=jnp.float32)
    out3 = loss_kl(x3, t3, T3, block_rows=32, block_cols=128)
    jax.block_until_ready(out3)
    ref3 = _loss_kl_ref(x3, t3, T3)
    assert jnp.allclose(out3, ref3, rtol=2e-3, atol=1e-4), (out3, ref3)

    # 4) bf16-EUP path (v6e/v7x transcendental relief) — looser tolerance by design.
    out4 = loss_kl(x2, t2, T2, block_rows=128, exp_in_bf16=True)
    jax.block_until_ready(out4)
    assert jnp.allclose(out4, ref2, rtol=5e-2, atol=1e-2), (out4, ref2)

    print("KERNEL_OK")
</pallas_src>

<mosaic_0001>
module attributes {stable_mosaic.version = 11 : i64} {
  func.func @_kl_kernel(%arg0: i32, %arg1: i32, %arg2: i32, %arg3: memref<8x32xf32, #tpu.memory_space<vmem>>, %arg4: memref<8x32xf32, #tpu.memory_space<vmem>>, %arg5: memref<8x128xf32, #tpu.memory_space<vmem>>, %arg6: memref<8x1xf32, #tpu.memory_space<vmem>>, %arg7: memref<8x1xf32, #tpu.memory_space<vmem>>, %arg8: memref<8x1xf32, #tpu.memory_space<vmem>>, %arg9: memref<8x1xf32, #tpu.memory_space<vmem>>, %arg10: memref<8x1xf32, #tpu.memory_space<vmem>>, %arg11: memref<8x1xf32, #tpu.memory_space<vmem>>) attributes {dimension_semantics = [#tpu.dimension_semantics<arbitrary>, #tpu.dimension_semantics<arbitrary>, #tpu.dimension_semantics<arbitrary>], iteration_bounds = array<i64: 1, 1, 1>, scalar_prefetch = 0 : i64, scratch_operands = 6 : i64, tpu.core_type = #tpu.core_type<tc>, window_params = [{transform_indices = @transform_0, window_bounds = array<i64: 8, 32>}, {transform_indices = @transform_1, window_bounds = array<i64: 8, 32>}, {transform_indices = @transform_2, window_bounds = array<i64: 8, 128>}]} {
    %c0_i32 = arith.constant 0 : i32
    %0 = arith.cmpi eq, %arg1, %c0_i32 : i32
    %c0_i32_0 = arith.constant 0 : i32
    %1 = arith.cmpi eq, %arg2, %c0_i32_0 : i32
    %2 = arith.andi %0, %1 : i1
    %3 = arith.extui %2 : i1 to i32
    %c0_i32_1 = arith.constant 0 : i32
    %4 = arith.cmpi ne, %3, %c0_i32_1 : i32
    scf.if %4 {
      %cst_42 = arith.constant 0.000000e+00 : f32
      %64 = vector.broadcast %cst_42 : f32 to vector<8x1xf32>
      %c0_43 = arith.constant 0 : index
      %c0_44 = arith.constant 0 : index
      %65 = vector.load %arg11[%c0_43, %c0_44] : memref<8x1xf32, #tpu.memory_space<vmem>>, vector<8x1xf32>
      tpu.vector_store %arg11[%c0_43, %c0_44], %64 {strides = array<i32>} : memref<8x1xf32, #tpu.memory_space<vmem>>, vector<8x1xf32>,
    } else {
    }
    %c0_i32_2 = arith.constant 0 : i32
    %5 = arith.cmpi eq, %arg2, %c0_i32_2 : i32
    %6 = arith.extui %5 : i1 to i32
    %c0_i32_3 = arith.constant 0 : i32
    %7 = arith.cmpi ne, %6, %c0_i32_3 : i32
    scf.if %7 {
      %cst_42 = arith.constant 0xFF800000 : f32
      %64 = vector.broadcast %cst_42 : f32 to vector<8x1xf32>
      %c0_43 = arith.constant 0 : index
      %c0_44 = arith.constant 0 : index
      %65 = vector.load %arg6[%c0_43, %c0_44] : memref<8x1xf32, #tpu.memory_space<vmem>>, vector<8x1xf32>
      tpu.vector_store %arg6[%c0_43, %c0_44], %64 {strides = array<i32>} : memref<8x1xf32, #tpu.memory_space<vmem>>, vector<8x1xf32>,
      %cst_45 = arith.constant 0xFF800000 : f32
      %66 = vector.broadcast %cst_45 : f32 to vector<8x1xf32>
      %c0_46 = arith.constant 0 : index
      %c0_47 = arith.constant 0 : index
      %67 = vector.load %arg7[%c0_46, %c0_47] : memref<8x1xf32, #tpu.memory_space<vmem>>, vector<8x1xf32>
      tpu.vector_store %arg7[%c0_46, %c0_47], %66 {strides = array<i32>} : memref<8x1xf32, #tpu.memory_space<vmem>>, vector<8x1xf32>,
      %cst_48 = arith.constant 0.000000e+00 : f32
      %68 = vector.broadcast %cst_48 : f32 to vector<8x1xf32>
      %c0_49 = arith.constant 0 : index
      %c0_50 = arith.constant 0 : index
      %69 = vector.load %arg8[%c0_49, %c0_50] : memref<8x1xf32, #tpu.memory_space<vmem>>, vector<8x1xf32>
      tpu.vector_store %arg8[%c0_49, %c0_50], %68 {strides = array<i32>} : memref<8x1xf32, #tpu.memory_space<vmem>>, vector<8x1xf32>,
      %cst_51 = arith.constant 0.000000e+00 : f32
      %70 = vector.broadcast %cst_51 : f32 to vector<8x1xf32>
      %c0_52 = arith.constant 0 : index
      %c0_53 = arith.constant 0 : index
      %71 = vector.load %arg9[%c0_52, %c0_53] : memref<8x1xf32, #tpu.memory_space<vmem>>, vector<8x1xf32>
      tpu.vector_store %arg9[%c0_52, %c0_53], %70 {strides = array<i32>} : memref<8x1xf32, #tpu.memory_space<vmem>>, vector<8x1xf32>,
      %cst_54 = arith.constant 0.000000e+00 : f32
      %72 = vector.broadcast %cst_54 : f32 to vector<8x1xf32>
      %c0_55 = arith.constant 0 : index
      %c0_56 = arith.constant 0 : index
      %73 = vector.load %arg10[%c0_55, %c0_56] : memref<8x1xf32, #tpu.memory_space<vmem>>, vector<8x1xf32>
      tpu.vector_store %arg10[%c0_55, %c0_56], %72 {strides = array<i32>} : memref<8x1xf32, #tpu.memory_space<vmem>>, vector<8x1xf32>,
    } else {
    }
    %c0 = arith.constant 0 : index
    %c0_4 = arith.constant 0 : index
    %8 = vector.load %arg3[%c0, %c0_4] : memref<8x32xf32, #tpu.memory_space<vmem>>, vector<8x32xf32>
    %cst = arith.constant 1.000000e+00 : f32
    %9 = vector.broadcast %cst : f32 to vector<8x32xf32>
    %10 = arith.mulf %8, %9 : vector<8x32xf32>
    %c0_5 = arith.constant 0 : index
    %c0_6 = arith.constant 0 : index
    %11 = vector.load %arg4[%c0_5, %c0_6] : memref<8x32xf32, #tpu.memory_space<vmem>>, vector<8x32xf32>
    %cst_7 = arith.constant 1.000000e+00 : f32
    %12 = vector.broadcast %cst_7 : f32 to vector<8x32xf32>
    %13 = arith.mulf %11, %12 : vector<8x32xf32>
    %14 = arith.subf %13, %10 : vector<8x32xf32>
    %cst_8 = arith.constant dense<0xFF800000> : vector<8xf32>
    %15 = vector.multi_reduction <maximumf>, %10, %cst_8 [1] : vector<8x32xf32> to vector<8xf32>
    %16 = vector.shape_cast %15 : vector<8xf32> to vector<8x1xf32>
    %cst_9 = arith.constant dense<0xFF800000> : vector<8xf32>
    %17 = vector.multi_reduction <maximumf>, %13, %cst_9 [1] : vector<8x32xf32> to vector<8xf32>
    %18 = vector.shape_cast %17 : vector<8xf32> to vector<8x1xf32>
    %c0_10 = arith.constant 0 : index
    %c0_11 = arith.constant 0 : index
    %19 = vector.load %arg6[%c0_10, %c0_11] : memref<8x1xf32, #tpu.memory_space<vmem>>, vector<8x1xf32>
    %20 = arith.maximumf %19, %16 : vector<8x1xf32>
    %c0_12 = arith.constant 0 : index
    %c0_13 = arith.constant 0 : index
    %21 = vector.load %arg7[%c0_12, %c0_13] : memref<8x1xf32, #tpu.memory_space<vmem>>, vector<8x1xf32>
    %22 = arith.maximumf %21, %18 : vector<8x1xf32>
    %23 = vector.broadcast %20 : vector<8x1xf32> to vector<8x32xf32>
    %24 = arith.subf %10, %23 : vector<8x32xf32>
    %25 = math.exp %24 : vector<8x32xf32>
    %26 = vector.broadcast %22 : vector<8x1xf32> to vector<8x32xf32>
    %27 = arith.subf %13, %26 : vector<8x32xf32>
    %28 = math.exp %27 : vector<8x32xf32>
    %c0_14 = arith.constant 0 : index
    %c0_15 = arith.constant 0 : index
    %29 = vector.load %arg6[%c0_14, %c0_15] : memref<8x1xf32, #tpu.memory_space<vmem>>, vector<8x1xf32>
    %30 = arith.subf %29, %20 : vector<8x1xf32>
    %31 = math.exp %30 : vector<8x1xf32>
    %c0_16 = arith.constant 0 : index
    %c0_17 = arith.constant 0 : index
    %32 = vector.load %arg7[%c0_16, %c0_17] : memref<8x1xf32, #tpu.memory_space<vmem>>, vector<8x1xf32>
    %33 = arith.subf %32, %22 : vector<8x1xf32>
    %34 = math.exp %33 : vector<8x1xf32>
    %c0_18 = arith.constant 0 : index
    %c0_19 = arith.constant 0 : index
    %35 = vector.load %arg8[%c0_18, %c0_19] : memref<8x1xf32, #tpu.memory_space<vmem>>, vector<8x1xf32>
    %36 = arith.mulf %31, %35 : vector<8x1xf32>
    %cst_20 = arith.constant dense<0.000000e+00> : vector<8xf32>
    %37 = vector.multi_reduction <add>, %25, %cst_20 [1] : vector<8x32xf32> to vector<8xf32>
    %38 = vector.shape_cast %37 : vector<8xf32> to vector<8x1xf32>
    %39 = arith.addf %36, %38 : vector<8x1xf32>
    %c0_21 = arith.constant 0 : index
    %c0_22 = arith.constant 0 : index
    %40 = vector.load %arg8[%c0_21, %c0_22] : memref<8x1xf32, #tpu.memory_space<vmem>>, vector<8x1xf32>
    tpu.vector_store %arg8[%c0_21, %c0_22], %39 {strides = array<i32>} : memref<8x1xf32, #tpu.memory_space<vmem>>, vector<8x1xf32>,
    %c0_23 = arith.constant 0 : index
    %c0_24 = arith.constant 0 : index
    %41 = vector.load %arg9[%c0_23, %c0_24] : memref<8x1xf32, #tpu.memory_space<vmem>>, vector<8x1xf32>
    %42 = arith.mulf %34, %41 : vector<8x1xf32>
    %cst_25 = arith.constant dense<0.000000e+00> : vector<8xf32>
    %43 = vector.multi_reduction <add>, %28, %cst_25 [1] : vector<8x32xf32> to vector<8xf32>
    %44 = vector.shape_cast %43 : vector<8xf32> to vector<8x1xf32>
    %45 = arith.addf %42, %44 : vector<8x1xf32>
    %c0_26 = arith.constant 0 : index
    %c0_27 = arith.constant 0 : index
    %46 = vector.load %arg9[%c0_26, %c0_27] : memref<8x1xf32, #tpu.memory_space<vmem>>, vector<8x1xf32>
    tpu.vector_store %arg9[%c0_26, %c0_27], %45 {strides = array<i32>} : memref<8x1xf32, #tpu.memory_space<vmem>>, vector<8x1xf32>,
    %c0_28 = arith.constant 0 : index
    %c0_29 = arith.constant 0 : index
    %47 = vector.load %arg10[%c0_28, %c0_29] : memref<8x1xf32, #tpu.memory_space<vmem>>, vector<8x1xf32>
    %48 = arith.mulf %34, %47 : vector<8x1xf32>
    %49 = arith.mulf %28, %14 : vector<8x32xf32>
    %cst_30 = arith.constant dense<0.000000e+00> : vector<8xf32>
    %50 = vector.multi_reduction <add>, %49, %cst_30 [1] : vector<8x32xf32> to vector<8xf32>
    %51 = vector.shape_cast %50 : vector<8xf32> to vector<8x1xf32>
    %52 = arith.addf %48, %51 : vector<8x1xf32>
    %c0_31 = arith.constant 0 : index
    %c0_32 = arith.constant 0 : index
    %53 = vector.load %arg10[%c0_31, %c0_32] : memref<8x1xf32, #tpu.memory_space<vmem>>, vector<8x1xf32>
    tpu.vector_store %arg10[%c0_31, %c0_32], %52 {strides = array<i32>} : memref<8x1xf32, #tpu.memory_space<vmem>>, vector<8x1xf32>,
    %c0_33 = arith.constant 0 : index
    %c0_34 = arith.constant 0 : index
    %54 = vector.load %arg6[%c0_33, %c0_34] : memref<8x1xf32, #tpu.memory_space<vmem>>, vector<8x1xf32>
    tpu.vector_store %arg6[%c0_33, %c0_34], %20 {strides = array<i32>} : memref<8x1xf32, #tpu.memory_space<vmem>>, vector<8x1xf32>,
    %c0_35 = arith.constant 0 : index
    %c0_36 = arith.constant 0 : index
    %55 = vector.load %arg7[%c0_35, %c0_36] : memref<8x1xf32, #tpu.memory_space<vmem>>, vector<8x1xf32>
    tpu.vector_store %arg7[%c0_35, %c0_36], %22 {strides = array<i32>} : memref<8x1xf32, #tpu.memory_space<vmem>>, vector<8x1xf32>,
    %c0_i32_37 = arith.constant 0 : i32
    %56 = arith.cmpi eq, %arg2, %c0_i32_37 : i32
    %57 = arith.extui %56 : i1 to i32
    %c0_i32_38 = arith.constant 0 : i32
    %58 = arith.cmpi ne, %57, %c0_i32_38 : i32
    scf.if %58 {
      %c0_42 = arith.constant 0 : index
      %c0_43 = arith.constant 0 : index
      %64 = vector.load %arg9[%c0_42, %c0_43] : memref<8x1xf32, #tpu.memory_space<vmem>>, vector<8x1xf32>
      %65 = tpu.reciprocal %64 {approx = true} : vector<8x1xf32> -> vector<8x1xf32>
      %c0_44 = arith.constant 0 : index
      %c0_45 = arith.constant 0 : index
      %66 = vector.load %arg10[%c0_44, %c0_45] : memref<8x1xf32, #tpu.memory_space<vmem>>, vector<8x1xf32>
      %67 = arith.mulf %66, %65 : vector<8x1xf32>
      %c0_46 = arith.constant 0 : index
      %c0_47 = arith.constant 0 : index
      %68 = vector.load %arg6[%c0_46, %c0_47] : memref<8x1xf32, #tpu.memory_space<vmem>>, vector<8x1xf32>
      %c0_48 = arith.constant 0 : index
      %c0_49 = arith.constant 0 : index
      %69 = vector.load %arg7[%c0_48, %c0_49] : memref<8x1xf32, #tpu.memory_space<vmem>>, vector<8x1xf32>
      %70 = arith.subf %68, %69 : vector<8x1xf32>
      %71 = arith.addf %67, %70 : vector<8x1xf32>
      %c0_50 = arith.constant 0 : index
      %c0_51 = arith.constant 0 : index
      %72 = vector.load %arg8[%c0_50, %c0_51] : memref<8x1xf32, #tpu.memory_space<vmem>>, vector<8x1xf32>
      %73 = math.log %72 : vector<8x1xf32>
      %74 = math.log %64 : vector<8x1xf32>
      %75 = arith.subf %73, %74 : vector<8x1xf32>
      %76 = arith.addf %71, %75 : vector<8x1xf32>
      %c1_i32 = arith.constant 1 : i32
      %77 = arith.muli %arg0, %c1_i32 : i32
      %78 = arith.addi %77, %arg1 : i32
      %c8_i32 = arith.constant 8 : i32
      %79 = arith.muli %78, %c8_i32 : i32
      %80 = tpu.iota {dimensions = array<i32: 0>} : vector<8x1xi32>
      %81 = vector.broadcast %79 : i32 to vector<8x1xi32>
      %82 = arith.addi %81, %80 : vector<8x1xi32>
      %c8_i32_52 = arith.constant 8 : i32
      %83 = vector.broadcast %c8_i32_52 : i32 to vector<8x1xi32>
      %84 = arith.cmpi slt, %82, %83 : vector<8x1xi32>
      %cst_53 = arith.constant 0.000000e+00 : f32
      %85 = vector.broadcast %cst_53 : f32 to vector<8x1xf32>
      %86 = arith.select %84, %76, %85 : vector<8x1xi1>, vector<8x1xf32>
      %c0_54 = arith.constant 0 : index
      %c0_55 = arith.constant 0 : index
      %87 = vector.load %arg11[%c0_54, %c0_55] : memref<8x1xf32, #tpu.memory_space<vmem>>, vector<8x1xf32>
      %88 = arith.addf %87, %86 : vector<8x1xf32>
      %c0_56 = arith.constant 0 : index
      %c0_57 = arith.constant 0 : index
      %89 = vector.load %arg11[%c0_56, %c0_57] : memref<8x1xf32, #tpu.memory_space<vmem>>, vector<8x1xf32>
      tpu.vector_store %arg11[%c0_56, %c0_57], %88 {strides = array<i32>} : memref<8x1xf32, #tpu.memory_space<vmem>>, vector<8x1xf32>,
    } else {
    }
    %c0_i32_39 = arith.constant 0 : i32
    %59 = arith.cmpi eq, %arg1, %c0_i32_39 : i32
    %c0_i32_40 = arith.constant 0 : i32
    %60 = arith.cmpi eq, %arg2, %c0_i32_40 : i32
    %61 = arith.andi %59, %60 : i1
    %62 = arith.extui %61 : i1 to i32
    %c0_i32_41 = arith.constant 0 : i32
    %63 = arith.cmpi ne, %62, %c0_i32_41 : i32
    scf.if %63 {
      %c0_42 = arith.constant 0 : index
      %c0_43 = arith.constant 0 : index
      %64 = vector.load %arg11[%c0_42, %c0_43] : memref<8x1xf32, #tpu.memory_space<vmem>>, vector<8x1xf32>
      %65 = vector.shape_cast %64 : vector<8x1xf32> to vector<1x8x1xf32>
      %cst_44 = arith.constant dense<0.000000e+00> : vector<1xf32>
      %66 = vector.multi_reduction <add>, %65, %cst_44 [1, 2] : vector<1x8x1xf32> to vector<1xf32>
      %67 = vector.shape_cast %66 : vector<1xf32> to vector<1x1x1xf32>
      %68 = vector.extract %67[0, 0, 0] : f32 from vector<1x1x1xf32>
      %69 = vector.broadcast %68 : f32 to vector<1x1xf32>
      %70 = vector.shape_cast %69 : vector<1x1xf32> to vector<1x1xf32>
      %71 = vector.broadcast %70 : vector<1x1xf32> to vector<8x128xf32>
      %c0_45 = arith.constant 0 : index
      %c0_46 = arith.constant 0 : index
      %72 = vector.load %arg5[%c0_45, %c0_46] : memref<8x128xf32, #tpu.memory_space<vmem>>, vector<8x128xf32>
      tpu.vector_store %arg5[%c0_45, %c0_46], %71 {strides = array<i32>} : memref<8x128xf32, #tpu.memory_space<vmem>>, vector<8x128xf32>,
    } else {
    }
    return
  }
  func.func @transform_0(%arg0: i32, %arg1: i32, %arg2: i32) -> (i32, i32) {
    %c1_i32 = arith.constant 1 : i32
    %0 = arith.muli %arg0, %c1_i32 : i32
    %1 = arith.addi %0, %arg1 : i32
    %c0_i32 = arith.constant 0 : i32
    %2 = arith.minsi %1, %c0_i32 : i32
    %c0_i32_0 = arith.constant 0 : i32
    return %2, %arg2 : i32, i32
  }
  func.func @transform_1(%arg0: i32, %arg1: i32, %arg2: i32) -> (i32, i32) {
    %c1_i32 = arith.constant 1 : i32
    %0 = arith.muli %arg0, %c1_i32 : i32
    %1 = arith.addi %0, %arg1 : i32
    %c0_i32 = arith.constant 0 : i32
    %2 = arith.minsi %1, %c0_i32 : i32
    %c0_i32_0 = arith.constant 0 : i32
    return %2, %arg2 : i32, i32
  }
  func.func @transform_2(%arg0: i32, %arg1: i32, %arg2: i32) -> (i32, i32) {
    %c0_i32 = arith.constant 0 : i32
    %c0_i32_0 = arith.constant 0 : i32
    return %arg0, %c0_i32 : i32, i32
  }
}

</mosaic_0001>

<bundles_post_ra>
// kernel: tpu_custom_call.1
= control target key start
LH: loop header
LB: loop body
LE: loop exit
PB: predicated region body
PF: predicated region fallthrough
CT: control target
= control target key end

     0   :  { %7 = vsyncpa [#allocation9], 0  ;;  %s365_s0 = inlined_call_operand.hbm [shape: f32[8,32], index: 0, kind: input, shape index: {}]   ;;  %s366_s1 = inlined_call_operand.hbm [shape: f32[8,32], index: 1, kind: input, shape index: {}]   ;;  %s367_s2 = inlined_call_operand.hbm [shape: f32[8,128], index: 2, kind: output, shape index: {}]  }
   0x1   :  { %8 = vsyncpa [#allocation12], 0 }
   0x2   :  { %9 = vsyncpa [#allocation10], 0  ;;  %s290_s9 = smov [#allocation8]   ;;  %s291_s11 = smov [#allocation11]  }
   0x3   :  { %s21_s10 = sshll.u32 %s290_s9, 4  ;;  %s36_s12 = sshll.u32 %s291_s11, 4  ;;  %s22_s10 = int_to_ptr.vmem [resolvable:$true] %s21_s10  ;;  %s37_s12 = int_to_ptr.vmem [resolvable:$true] %s36_s12 }
   0x4   :  { %s218_s15 = scalar_lea.hbm %s365_s0, 128 }
   0x5   :  { %p219_p0 = scmp.ne.s32.totalorder %s365_s0, %s218_s15  ;;  %p222_p1 = scmp.lt.u32.totalorder %s218_s15, %s365_s0 }
   0x7   :  { %p224_p2 = pnand %p222_p1, %p219_p0 }
   0x9   :  { %227 = shalt.err (!%p224_p2)
}
   0xa   :  { %s228_s20 = scalar_lea.vmem %s22_s10, 128  ;;  %p233_p4 = scmp.lt.s32.totalorder %s22_s10, %s22_s10 }
   0xb   :  { %p229_p3 = scmp.ne.s32.totalorder %s22_s10, %s228_s20  ;;  %p234_p5 = scmp.lt.s32.totalorder %s228_s20, %s228_s20 }
   0xd   :  { %p235_p6 = por %p234_p5, %p233_p4 }
   0xf   :  { %p236_p7 = pnand %p235_p6, %p229_p3 }
  0x11   :  { %239 = shalt.err (!%p236_p7)
}
  0x12   :  { %24 = dma.hbm_to_vmem [thread:$0]  %s365_s0, 128, %s22_s10, [#allocation9]  }
  0x13   :  { %s240_s25 = scalar_lea.hbm %s366_s1, 128 }
  0x14   :  { %p241_p8 = scmp.ne.s32.totalorder %s366_s1, %s240_s25  ;;  %p244_p9 = scmp.lt.u32.totalorder %s240_s25, %s366_s1 }
  0x16   :  { %p246_p10 = pnand %p244_p9, %p241_p8 }
  0x18   :  { %249 = shalt.err (!%p246_p10)
}
  0x19   :  { %s250_s30 = scalar_lea.vmem %s37_s12, 128  ;;  %p255_p12 = scmp.lt.s32.totalorder %s37_s12, %s37_s12 }
  0x1a   :  { %p251_p11 = scmp.ne.s32.totalorder %s37_s12, %s250_s30  ;;  %p256_p13 = scmp.lt.s32.totalorder %s250_s30, %s250_s30 }
  0x1c   :  { %p257_p0 = por %p256_p13, %p255_p12 }
  0x1e   :  { %p258_p1 = pnand %p257_p0, %p251_p11 }
  0x20   :  { %261 = shalt.err (!%p258_p1)
}
  0x21   :  { %39 = dma.hbm_to_vmem [thread:$0]  %s366_s1, 128, %s37_s12, [#allocation12]  }
  0x22   :  { %284 = dma.done.wait [#allocation9], 128  }
  0x23   :  { %285 = vsyncadd [#allocation9], 4294967168 }
  0x24   :  { %286 = dma.done.wait [#allocation12], 128  }
  0x25   :  { %287 = vsyncadd [#allocation12], 4294967168  ;;  %vm58_vm0 = vcmask 7168   ;;  %v292_v0 = vmov -inf   ;;  %vm72_vm1 = vcmask 261120   ;;  %v69_v1 = vld [vmem:[#allocation8] sm:$0xff] }
  0x26   :  { %64 = vst.msk [vmem:[#allocation2] sm:$0xff] %vm58_vm0, %v292_v0  ;;  %65 = vst.msk [vmem:[#allocation3] sm:$0xff] %vm58_vm0, %v292_v0  ;;  %v70_v2 = vld [vmem:[#allocation11] sm:$0xff]  ;;  %v73_v3 = vsel %vm72_vm1, %v69_v1, -inf  ;;  %v293_v5 = vmov 0   ;;  %v294_v6 = vmov 0.0  }
  0x27   :  { %74 = vmax.xlane.f32.xlu0 %v73_v3  ;;  %v76_v4 = vsel %vm72_vm1, %v70_v2, -inf  ;;  %202 = vset.pattern.permute.xlu1 %v293_v5  ;;  %66 = vst.msk [vmem:[#allocation4] sm:$0xff] %vm58_vm0, %v294_v6  ;;  %59 = vst.msk [vmem:[#allocation7] sm:$0xff] %vm58_vm0, %v294_v6  ;;  %v71_v23 = vsub.f32 %v70_v2, %v69_v1  ;;  %s295_s1 = smov [#allocation13]  }
  0x28   :  { %203 = vset.pattern.permute.xlu0 %v293_v5  ;;  %67 = vst.msk [vmem:[#allocation5] sm:$0xff] %vm58_vm0, %v294_v6  ;;  %68 = vst.msk [vmem:[#allocation6] sm:$0xff] %vm58_vm0, %v294_v6  ;;  %s180_s4 = sshll.u32 %s295_s1, 4  ;;  %s181_s4 = int_to_ptr.vmem [resolvable:$true] %s180_s4 }
  0x29   :  { %s262_s6 = scalar_lea.vmem %s181_s4, 128  ;;  %p267_p3 = scmp.lt.s32.totalorder %s181_s4, %s181_s4 }
  0x2a   :  { %p263_p2 = scmp.ne.s32.totalorder %s181_s4, %s262_s6  ;;  %p268_p4 = scmp.lt.s32.totalorder %s262_s6, %s262_s6 }
  0x2b   :  { %77 = vmax.xlane.f32.xlu0 %v76_v4 }
  0x2c   :  { %p269_p5 = por %p268_p4, %p267_p3 }
  0x2d   :  { %v79_v7 = vld [vmem:[#allocation2] sm:$0xff]  ;;  %v81_v10 = vld [vmem:[#allocation3] sm:$0xff] }
  0x2e   :  { %v105_v31 = vld [vmem:[#allocation4] sm:$0xff]  ;;  %v156_v58 = vld [vmem:[#allocation7] sm:$0xff]  ;;  %p270_p6 = pnand %p269_p5, %p263_p2 }
  0x2f   :  { %v113_v35 = vld [vmem:[#allocation5] sm:$0xff]  ;;  %v120_v37 = vld [vmem:[#allocation6] sm:$0xff] }
  0xb4   :  { %v75_v8 = vpop.xlane.xlu0 %74 }
  0xb5   :  { %v80_v9 = vmax.f32 %v79_v7, %v75_v8 }
  0xb7   :  { %v99_v11 = vsub.f32 %v79_v7, %v80_v9  ;;  %128 = vst.msk [vmem:[#allocation2] sm:$0xff] %vm58_vm0, %v80_v9  ;;  %85 = vperm.xlu1 %202, %v80_v9  }
  0xb8   :  { %v78_v12 = vpop.xlane.xlu0 %77 }
  0xb9   :  { %v82_v13 = vmax.f32 %v81_v10, %v78_v12  ;;  %v100_v28 = vmul.f32 1.442695, %v99_v11 }
  0xbb   :  { %v102_v14 = vsub.f32 %v81_v10, %v82_v13  ;;  %129 = vst.msk [vmem:[#allocation3] sm:$0xff] %vm58_vm0, %v82_v13  ;;  %93 = vperm.xlu1 %202, %v82_v13  }
  0xbd   :  { %v103_v29 = vmul.f32 1.442695, %v102_v14 }
  0xbe   :  { %v137_v49 = vld [vmem:[#allocation2] sm:$0xff] }
  0xc2   :  { %v138_v46 = vld [vmem:[#allocation3] sm:$0xff] }
  0xc3   :  { %v139_v52 = vsub.f32 %v137_v49, %v138_v46 }
 0x136   :  { %v86_v15 = vpop.permute.xlu1 %85 }
 0x137   :  { %v88_v16 = vsub.f32 %v69_v1, %v86_v15 }
 0x139   :  { %v89_v17 = vmul.f32 1.442695, %v88_v16 }
 0x13a   :  { %v94_v18 = vpop.permute.xlu1 %93 }
 0x13b   :  { %204 = vpow2.f32 %v89_v17  ;;  %v96_v19 = vsub.f32 %v70_v2, %v94_v18 }
 0x13d   :  { %v97_v20 = vmul.f32 1.442695, %v96_v19 }
 0x13f   :  { %206 = vpow2.f32 %v97_v20 }
 0x140   :  { %208 = vpow2.f32 %v100_v28 }
 0x141   :  { %210 = vpow2.f32 %v103_v29 }
 0x145   :  { %v205_v21 = vpop.eup %204 }
 0x146   :  { %v107_v22 = vsel %vm72_vm1, %v205_v21, 0.0 }
 0x147   :  { %108 = vadd.xlane.f32.xlu0 %v107_v22 }
 0x149   :  { %v207_v24 = vpop.eup %206 }
 0x14a   :  { %v115_v25 = vsel %vm72_vm1, %v207_v24, 0.0  ;;  %v122_v26 = vmul.f32 %v207_v24, %v71_v23  ;;  %v209_v30 = vpop.eup %208 }
 0x14b   :  { %116 = vadd.xlane.f32.xlu1 %v115_v25  ;;  %v106_v32 = vmul.f32 %v209_v30, %v105_v31  ;;  %v211_v33 = vpop.eup %210 }
 0x14c   :  { %v123_v27 = vsel %vm72_vm1, %v122_v26, 0.0  ;;  %v114_v38 = vmul.f32 %v211_v33, %v113_v35  ;;  %v121_v41 = vmul.f32 %v211_v33, %v120_v37 }
 0x14d   :  { %124 = vadd.xlane.f32.xlu0 %v123_v27 }
 0x1d4   :  { %v109_v34 = vpop.xlane.xlu0 %108 }
 0x1d5   :  { %v110_v36 = vadd.f32 %v109_v34, %v106_v32 }
 0x1d7   :  { %112 = vst.msk [vmem:[#allocation4] sm:$0xff] %vm58_vm0, %v110_v36 }
 0x1d8   :  { %v117_v39 = vpop.xlane.xlu1 %116 }
 0x1d9   :  { %v118_v40 = vadd.f32 %v117_v39, %v114_v38 }
 0x1da   :  { %v125_v42 = vpop.xlane.xlu0 %124 }
 0x1db   :  { %119 = vst.msk [vmem:[#allocation5] sm:$0xff] %vm58_vm0, %v118_v40  ;;  %v126_v43 = vadd.f32 %v125_v42, %v121_v41 }
 0x1dd   :  { %127 = vst.msk [vmem:[#allocation6] sm:$0xff] %vm58_vm0, %v126_v43 }
 0x1de   :  { %v141_v44 = vld [vmem:[#allocation4] sm:$0xff] }
 0x1df   :  { %212 = vlog2.f32 %v141_v44 }
 0x1e2   :  { %v133_v45 = vld [vmem:[#allocation5] sm:$0xff] }
 0x1e3   :  { %214 = vrcp.f32 %v133_v45 }
 0x1e4   :  { %216 = vlog2.f32 %v133_v45  ;;  %v135_v50 = vld [vmem:[#allocation6] sm:$0xff] }
 0x1e9   :  { %v213_v47 = vpop.eup %212 }
 0x1ea   :  { %v143_v54 = vmul.f32 0.6931472, %v213_v47 }
 0x1ed   :  { %v215_v48 = vpop.eup %214 }
 0x1ee   :  { %v217_v51 = vpop.eup %216  ;;  %v136_v53 = vmul.f32 %v215_v48, %v135_v50 }
 0x1ef   :  { %v145_v55 = vmul.f32 0.6931472, %v217_v51 }
 0x1f0   :  { %v140_v56 = vadd.f32 %v139_v52, %v136_v53 }
 0x1f1   :  { %v146_v57 = vsub.f32 %v143_v54, %v145_v55 }
 0x1f3   :  { %v147_v59 = vadd.f32 %v146_v57, %v140_v56 }
 0x1f5   :  { %v157_v60 = vadd.f32 %v156_v58, %v147_v59 }
 0x1f7   :  { %158 = vst.msk [vmem:[#allocation7] sm:$0xff] %vm58_vm0, %v157_v60 }
 0x1fe   :  { %v161_v61 = vld [vmem:[#allocation7] sm:$0xff] }
 0x1ff   :  { %v162_v62 = vsel %vm58_vm0, %v161_v61, 0.0 }
 0x200   :  { %163 = vadd.xlane.f32.xlu0 %v162_v62 }
 0x28d   :  { %v164_v63 = vpop.xlane.xlu0 %163 }
 0x28e   :  { %v165_v0 = vrot.slane %v164_v63, 4 }
 0x290   :  { %v166_v1 = vadd.f32 %v165_v0, %v164_v63 }
 0x292   :  { %v167_v2 = vrot.slane %v166_v1, 2 }
 0x294   :  { %v168_v3 = vadd.f32 %v167_v2, %v166_v1 }
 0x296   :  { %v169_v4 = vrot.slane %v168_v3, 1 }
 0x298   :  { %v170_v5 = vadd.f32 %v169_v4, %v168_v3 }
 0x29a   :  { %194 = vpush %v170_v5 }
 0x2cb   :  { %s195_s5 = spop %194 }
 0x2cc   :  { %v172_v6 = vstv %s195_s5 }
 0x2cd   :  { %173 = vst [vmem:[#allocation13] sm:$0xff] %v172_v6 }
 0x2ce   :  { %273 = shalt.err (!%p270_p6)
}
 0x2cf   :  { %s274_s9 = scalar_lea.hbm %s367_s2, 128 }
 0x2d0   :  { %p275_p7 = scmp.ne.s32.totalorder %s367_s2, %s274_s9  ;;  %p278_p8 = scmp.lt.u32.totalorder %s274_s9, %s367_s2 }
 0x2d2   :  { %p280_p9 = pnand %p278_p8, %p275_p7 }
 0x2d4   :  { %283 = shalt.err (!%p280_p9)
}
 0x2d5   :  { %183 = dma.vmem_to_hbm [thread:$0]  %s181_s4, 128, %s367_s2, [#allocation10]  }
 0x2d6   :  { %288 = dma.done.wait [#allocation10], 128  }
 0x2d7   :  { %289 = vsyncadd [#allocation10], 4294967168 }
 0x2d8   :  { %187 = vsyncpa [#allocation9], 1 }
 0x2d9   :  { %188 = vsyncpa [#allocation12], 1 }
 0x2da   :  { %189 = vsyncpa [#allocation10], 1 }

</bundles_post_ra>
